<compile_context>
chip_gen: v7x
topology: tpu7x:2x2x1
jax: 0.10.0
libtpu: 0.0.40
codegen_flags: <defaults>
</compile_context>

<pallas_src>
import functools

import jax
import jax.numpy as jnp
from jax.experimental import pallas as pl
from jax.experimental.pallas import tpu as pltpu

_LANES = 128
_TILE_ROWS_MAX = 1024          # 1024 rows x 128 lanes = 128K points per block


def _round_up(x, m):
    return ((x + m - 1) // m) * m


def _project3d_kernel(p_ref, pts_ref, out_ref, *, eps):
    """p_ref:   (B*12,) f32 in SMEM; pre-scaled 3x4 projection, row-major.
       pts_ref: (1, 4, tile_rows, 128) VMEM block of homogeneous points.
       out_ref: (1, 2, tile_rows, 128) VMEM block of normalized pixel coords."""
    base = 12 * pl.program_id(0)

    x = pts_ref[0, 0].astype(jnp.float32)      # (tile_rows, 128) sublane-dense
    y = pts_ref[0, 1].astype(jnp.float32)
    z = pts_ref[0, 2].astype(jnp.float32)
    w = pts_ref[0, 3].astype(jnp.float32)

    def proj_row(r):
        o = base + 4 * r
        # 4 scalar(SMEM)-broadcast FMAs on the VPU over a dense tile.
        return (p_ref[o] * x + p_ref[o + 1] * y
                + p_ref[o + 2] * z + p_ref[o + 3] * w)

    cam_x = proj_row(0)                        # already scaled by 2 / (W - 1)
    cam_y = proj_row(1)                        # already scaled by 2 / (H - 1)
    den = proj_row(2) + jnp.float32(eps)       # eps added exactly as in torch

    # EUP approximate reciprocal (separate VLIW slot) + one Newton-Raphson
    # refinement so accuracy stays at f32-divide level.
    inv = pl.reciprocal(den, approx=True)
    inv = inv * (jnp.float32(2.0) - den * inv)

    # Direct dense stores of each output row (no sublane concat / relayout).
    out_ref[0, 0] = (cam_x * inv - jnp.float32(1.0)).astype(out_ref.dtype)
    out_ref[0, 1] = (cam_y * inv - jnp.float32(1.0)).astype(out_ref.dtype)


def project3d(points, K, T, *, height, width, eps=1e-7, channels_last=True):
    """points: (B, 4, H*W), K: (B, 4, 4), T: (B, 4, 4).

    channels_last=True returns (B, H, W, 2) matching the PyTorch module.
    channels_last=False returns the kernel-native planar (B, 2, H, W) and
    skips the extra HBM pass of the final transpose (preferred when the
    consumer, e.g. a grid_sample kernel, can read the x/y planes directly)."""
    B, four, N = points.shape
    assert four == 4 and N == height * width

    # Hoist P = (K @ T)[:, :3, :] out of the kernel and fold the pixel
    # normalization ((x/(W-1) - 0.5) * 2 == x * 2/(W-1) - 1) into rows 0/1.
    P = jnp.einsum("bij,bjk->bik",
                   K.astype(jnp.float32), T.astype(jnp.float32))[:, :3, :]
    scale = jnp.array([2.0 / (width - 1), 2.0 / (height - 1), 1.0],
                      dtype=jnp.float32)
    p_flat = (P * scale[None, :, None]).reshape(B * 12)          # 1-D SMEM

    # Sublane-dense view of the lane axis: N -> (n_rows, 128).
    n_rows = pl.cdiv(N, _LANES)
    n_pad = n_rows * _LANES
    pts = points
    if n_pad != N:
        # TODO(synk): have the producer allocate H*W rounded up to a multiple
        # of 128 so this (input-sized) pad copy disappears entirely.
        pts = jnp.pad(points, ((0, 0), (0, 0), (0, n_pad - N)))
    pts4 = pts.reshape(B, 4, n_rows, _LANES)   # metadata-only when no padding

    tile_rows = min(_TILE_ROWS_MAX, n_rows)
    n_tiles = pl.cdiv(n_rows, tile_rows)
    if B * n_tiles < 2 and n_rows >= 16:
        # v7x megacore: make sure both TensorCores get at least one grid step.
        tile_rows = _round_up(pl.cdiv(n_rows, 2), 8)
        n_tiles = pl.cdiv(n_rows, tile_rows)

    bytes_io = B * n_pad * (4 * pts.dtype.itemsize + 2 * points.dtype.itemsize)
    out = pl.pallas_call(
        functools.partial(_project3d_kernel, eps=eps),
        out_shape=jax.ShapeDtypeStruct((B, 2, n_rows, _LANES), points.dtype),
        grid=(B, n_tiles),
        in_specs=[
            pl.BlockSpec(memory_space=pltpu.MemorySpace.SMEM),        # p_flat
            pl.BlockSpec((1, 4, tile_rows, _LANES),
                         lambda b, t: (b, 0, t, 0)),                  # points
        ],
        out_specs=pl.BlockSpec((1, 2, tile_rows, _LANES),
                               lambda b, t: (b, 0, t, 0)),
        compiler_params=pltpu.CompilerParams(
            dimension_semantics=("parallel", "parallel"),
            vmem_limit_bytes=32 * 1024 * 1024),
        cost_estimate=pl.CostEstimate(
            flops=30 * B * n_pad, transcendentals=B * n_pad,
            bytes_accessed=bytes_io),
    )(p_flat, pts4)

    pix = out.reshape(B, 2, n_pad)
    if n_pad != N:
        pix = pix[:, :, :N]                    # drop lane padding (ragged N)
    pix = pix.reshape(B, 2, height, width)
    if channels_last:
        # Plain-JAX glue to match the PyTorch (B, H, W, 2) output.  In a fused
        # pipeline pass channels_last=False and read the x/y planes directly
        # to skip this extra HBM read+write.
        pix = jnp.transpose(pix, (0, 2, 3, 1))
    return pix


def _project3d_ref(points, K, T, *, height, width, eps=1e-7):
    """Pure-JAX reference mirroring the PyTorch forward."""
    B = points.shape[0]
    P = jnp.einsum("bij,bjk->bik", K, T)[:, :3, :]
    cam = jnp.einsum("bij,bjn->bin", P, points)
    pix = cam[:, :2, :] / (cam[:, 2:3, :] + eps)
    pix = pix.reshape(B, 2, height, width).transpose(0, 2, 3, 1)
    pix = pix / jnp.array([width - 1, height - 1], dtype=pix.dtype)
    pix = (pix - 0.5) * 2.0
    return pix


if __name__ == "__main__":
    def run_case(B, H, W):
        N = H * W
        key = jax.random.PRNGKey(0)
        k1, k2 = jax.random.split(key, 2)

        # Homogeneous 3D points (x, y, z, 1) with z > 0.
        xyz = jax.random.normal(k1, (B, 3, N), dtype=jnp.float32)
        xyz = xyz.at[:, 2, :].set(jnp.abs(xyz[:, 2, :]) + 1.0)
        points = jnp.concatenate([xyz, jnp.ones((B, 1, N), jnp.float32)], axis=1)

        # Intrinsics K (pinhole, padded to 4x4) and extrinsics T (near-identity).
        fx, fy, cx, cy = 10.0, 10.0, W / 2.0, H / 2.0
        K_single = jnp.array(
            [[fx, 0.0, cx, 0.0],
             [0.0, fy, cy, 0.0],
             [0.0, 0.0, 1.0, 0.0],
             [0.0, 0.0, 0.0, 1.0]], dtype=jnp.float32)
        K = jnp.broadcast_to(K_single, (B, 4, 4))
        T = jnp.eye(4, dtype=jnp.float32)[None] + 0.01 * jax.random.normal(
            k2, (B, 4, 4), dtype=jnp.float32)

        ref = _project3d_ref(points, K, T, height=H, width=W, eps=1e-7)

        out = project3d(points, K, T, height=H, width=W, eps=1e-7)
        out = jax.block_until_ready(out)
        assert out.shape == (B, H, W, 2)
        assert jnp.allclose(out, ref, atol=1e-4, rtol=1e-4), (
            "channels_last max abs err = %g"
            % float(jnp.max(jnp.abs(out - ref))))

        planar = project3d(points, K, T, height=H, width=W, eps=1e-7,
                           channels_last=False)
        planar = jax.block_until_ready(planar)
        assert planar.shape == (B, 2, H, W)
        assert jnp.allclose(jnp.transpose(planar, (0, 2, 3, 1)), ref,
                            atol=1e-4, rtol=1e-4), (
            "planar max abs err = %g" % float(
                jnp.max(jnp.abs(jnp.transpose(planar, (0, 2, 3, 1)) - ref))))

    run_case(2, 16, 16)    # N = 256: no padding, tile == full row dim
    run_case(2, 10, 13)    # N = 130: exercises the minimal pad-to-128 path
    run_case(1, 40, 64)    # N = 2560, B = 1: exercises the megacore row split
                           # and a ragged partial last row-block
    print("KERNEL_OK")
</pallas_src>

<mosaic_0001>
module attributes {stable_mosaic.version = 11 : i64} {
  func.func @_project3d_kernel(%arg0: i32, %arg1: i32, %arg2: memref<24xf32, #tpu.memory_space<smem>>, %arg3: memref<1x4x2x128xf32, #tpu.memory_space<vmem>>, %arg4: memref<1x2x2x128xf32, #tpu.memory_space<vmem>>) attributes {dimension_semantics = [#tpu.dimension_semantics<parallel>, #tpu.dimension_semantics<parallel>], iteration_bounds = array<i64: 2, 1>, scalar_prefetch = 0 : i64, scratch_operands = 0 : i64, tpu.core_type = #tpu.core_type<tc>, window_params = [{transform_indices = @transform_0, window_bounds = array<i64: 24>}, {transform_indices = @transform_1, window_bounds = array<i64: 1, 4, 2, 128>}, {transform_indices = @transform_2, window_bounds = array<i64: 1, 2, 2, 128>}]} {
    %c12_i32 = arith.constant 12 : i32
    %0 = arith.muli %c12_i32, %arg0 : i32
    %c0 = arith.constant 0 : index
    %c0_0 = arith.constant 0 : index
    %c0_1 = arith.constant 0 : index
    %c0_2 = arith.constant 0 : index
    %1 = vector.load %arg3[%c0, %c0_0, %c0_1, %c0_2] : memref<1x4x2x128xf32, #tpu.memory_space<vmem>>, vector<1x1x2x128xf32>
    %2 = vector.shape_cast %1 : vector<1x1x2x128xf32> to vector<2x128xf32>
    %c0_3 = arith.constant 0 : index
    %c1 = arith.constant 1 : index
    %c0_4 = arith.constant 0 : index
    %c0_5 = arith.constant 0 : index
    %3 = vector.load %arg3[%c0_3, %c1, %c0_4, %c0_5] : memref<1x4x2x128xf32, #tpu.memory_space<vmem>>, vector<1x1x2x128xf32>
    %4 = vector.shape_cast %3 : vector<1x1x2x128xf32> to vector<2x128xf32>
    %c0_6 = arith.constant 0 : index
    %c2 = arith.constant 2 : index
    %c0_7 = arith.constant 0 : index
    %c0_8 = arith.constant 0 : index
    %5 = vector.load %arg3[%c0_6, %c2, %c0_7, %c0_8] : memref<1x4x2x128xf32, #tpu.memory_space<vmem>>, vector<1x1x2x128xf32>
    %6 = vector.shape_cast %5 : vector<1x1x2x128xf32> to vector<2x128xf32>
    %c0_9 = arith.constant 0 : index
    %c3 = arith.constant 3 : index
    %c0_10 = arith.constant 0 : index
    %c0_11 = arith.constant 0 : index
    %7 = vector.load %arg3[%c0_9, %c3, %c0_10, %c0_11] : memref<1x4x2x128xf32, #tpu.memory_space<vmem>>, vector<1x1x2x128xf32>
    %8 = vector.shape_cast %7 : vector<1x1x2x128xf32> to vector<2x128xf32>
    %c0_i32 = arith.constant 0 : i32
    %9 = arith.addi %0, %c0_i32 : i32
    %10 = arith.index_cast %9 : i32 to index
    %11 = memref.load %arg2[%10] : memref<24xf32, #tpu.memory_space<smem>>
    %12 = vector.broadcast %11 : f32 to vector<2x128xf32>
    %13 = arith.mulf %12, %2 : vector<2x128xf32>
    %c1_i32 = arith.constant 1 : i32
    %14 = arith.addi %9, %c1_i32 : i32
    %15 = arith.index_cast %14 : i32 to index
    %16 = memref.load %arg2[%15] : memref<24xf32, #tpu.memory_space<smem>>
    %17 = vector.broadcast %16 : f32 to vector<2x128xf32>
    %18 = arith.mulf %17, %4 : vector<2x128xf32>
    %19 = arith.addf %13, %18 : vector<2x128xf32>
    %c2_i32 = arith.constant 2 : i32
    %20 = arith.addi %9, %c2_i32 : i32
    %21 = arith.index_cast %20 : i32 to index
    %22 = memref.load %arg2[%21] : memref<24xf32, #tpu.memory_space<smem>>
    %23 = vector.broadcast %22 : f32 to vector<2x128xf32>
    %24 = arith.mulf %23, %6 : vector<2x128xf32>
    %25 = arith.addf %19, %24 : vector<2x128xf32>
    %c3_i32 = arith.constant 3 : i32
    %26 = arith.addi %9, %c3_i32 : i32
    %27 = arith.index_cast %26 : i32 to index
    %28 = memref.load %arg2[%27] : memref<24xf32, #tpu.memory_space<smem>>
    %29 = vector.broadcast %28 : f32 to vector<2x128xf32>
    %30 = arith.mulf %29, %8 : vector<2x128xf32>
    %31 = arith.addf %25, %30 : vector<2x128xf32>
    %c4_i32 = arith.constant 4 : i32
    %32 = arith.addi %0, %c4_i32 : i32
    %33 = arith.index_cast %32 : i32 to index
    %34 = memref.load %arg2[%33] : memref<24xf32, #tpu.memory_space<smem>>
    %35 = vector.broadcast %34 : f32 to vector<2x128xf32>
    %36 = arith.mulf %35, %2 : vector<2x128xf32>
    %c1_i32_12 = arith.constant 1 : i32
    %37 = arith.addi %32, %c1_i32_12 : i32
    %38 = arith.index_cast %37 : i32 to index
    %39 = memref.load %arg2[%38] : memref<24xf32, #tpu.memory_space<smem>>
    %40 = vector.broadcast %39 : f32 to vector<2x128xf32>
    %41 = arith.mulf %40, %4 : vector<2x128xf32>
    %42 = arith.addf %36, %41 : vector<2x128xf32>
    %c2_i32_13 = arith.constant 2 : i32
    %43 = arith.addi %32, %c2_i32_13 : i32
    %44 = arith.index_cast %43 : i32 to index
    %45 = memref.load %arg2[%44] : memref<24xf32, #tpu.memory_space<smem>>
    %46 = vector.broadcast %45 : f32 to vector<2x128xf32>
    %47 = arith.mulf %46, %6 : vector<2x128xf32>
    %48 = arith.addf %42, %47 : vector<2x128xf32>
    %c3_i32_14 = arith.constant 3 : i32
    %49 = arith.addi %32, %c3_i32_14 : i32
    %50 = arith.index_cast %49 : i32 to index
    %51 = memref.load %arg2[%50] : memref<24xf32, #tpu.memory_space<smem>>
    %52 = vector.broadcast %51 : f32 to vector<2x128xf32>
    %53 = arith.mulf %52, %8 : vector<2x128xf32>
    %54 = arith.addf %48, %53 : vector<2x128xf32>
    %c8_i32 = arith.constant 8 : i32
    %55 = arith.addi %0, %c8_i32 : i32
    %56 = arith.index_cast %55 : i32 to index
    %57 = memref.load %arg2[%56] : memref<24xf32, #tpu.memory_space<smem>>
    %58 = vector.broadcast %57 : f32 to vector<2x128xf32>
    %59 = arith.mulf %58, %2 : vector<2x128xf32>
    %c1_i32_15 = arith.constant 1 : i32
    %60 = arith.addi %55, %c1_i32_15 : i32
    %61 = arith.index_cast %60 : i32 to index
    %62 = memref.load %arg2[%61] : memref<24xf32, #tpu.memory_space<smem>>
    %63 = vector.broadcast %62 : f32 to vector<2x128xf32>
    %64 = arith.mulf %63, %4 : vector<2x128xf32>
    %65 = arith.addf %59, %64 : vector<2x128xf32>
    %c2_i32_16 = arith.constant 2 : i32
    %66 = arith.addi %55, %c2_i32_16 : i32
    %67 = arith.index_cast %66 : i32 to index
    %68 = memref.load %arg2[%67] : memref<24xf32, #tpu.memory_space<smem>>
    %69 = vector.broadcast %68 : f32 to vector<2x128xf32>
    %70 = arith.mulf %69, %6 : vector<2x128xf32>
    %71 = arith.addf %65, %70 : vector<2x128xf32>
    %c3_i32_17 = arith.constant 3 : i32
    %72 = arith.addi %55, %c3_i32_17 : i32
    %73 = arith.index_cast %72 : i32 to index
    %74 = memref.load %arg2[%73] : memref<24xf32, #tpu.memory_space<smem>>
    %75 = vector.broadcast %74 : f32 to vector<2x128xf32>
    %76 = arith.mulf %75, %8 : vector<2x128xf32>
    %77 = arith.addf %71, %76 : vector<2x128xf32>
    %cst = arith.constant 1.000000e-07 : f32
    %78 = vector.broadcast %cst : f32 to vector<2x128xf32>
    %79 = arith.addf %77, %78 : vector<2x128xf32>
    %80 = tpu.reciprocal %79 {approx = true} : vector<2x128xf32> -> vector<2x128xf32>
    %81 = arith.mulf %79, %80 : vector<2x128xf32>
    %cst_18 = arith.constant 2.000000e+00 : f32
    %82 = vector.broadcast %cst_18 : f32 to vector<2x128xf32>
    %83 = arith.subf %82, %81 : vector<2x128xf32>
    %84 = arith.mulf %80, %83 : vector<2x128xf32>
    %85 = arith.mulf %31, %84 : vector<2x128xf32>
    %cst_19 = arith.constant 1.000000e+00 : f32
    %86 = vector.broadcast %cst_19 : f32 to vector<2x128xf32>
    %87 = arith.subf %85, %86 : vector<2x128xf32>
    %c0_20 = arith.constant 0 : index
    %c0_21 = arith.constant 0 : index
    %c0_22 = arith.constant 0 : index
    %c0_23 = arith.constant 0 : index
    %88 = vector.load %arg4[%c0_20, %c0_21, %c0_22, %c0_23] : memref<1x2x2x128xf32, #tpu.memory_space<vmem>>, vector<1x1x2x128xf32>
    %89 = vector.shape_cast %88 : vector<1x1x2x128xf32> to vector<2x128xf32>
    %90 = vector.shape_cast %87 : vector<2x128xf32> to vector<1x1x2x128xf32>
    tpu.vector_store %arg4[%c0_20, %c0_21, %c0_22, %c0_23], %90 {strides = array<i32>} : memref<1x2x2x128xf32, #tpu.memory_space<vmem>>, vector<1x1x2x128xf32>,
    %91 = arith.mulf %54, %84 : vector<2x128xf32>
    %cst_24 = arith.constant 1.000000e+00 : f32
    %92 = vector.broadcast %cst_24 : f32 to vector<2x128xf32>
    %93 = arith.subf %91, %92 : vector<2x128xf32>
    %c0_25 = arith.constant 0 : index
    %c1_26 = arith.constant 1 : index
    %c0_27 = arith.constant 0 : index
    %c0_28 = arith.constant 0 : index
    %94 = vector.load %arg4[%c0_25, %c1_26, %c0_27, %c0_28] : memref<1x2x2x128xf32, #tpu.memory_space<vmem>>, vector<1x1x2x128xf32>
    %95 = vector.shape_cast %94 : vector<1x1x2x128xf32> to vector<2x128xf32>
    %96 = vector.shape_cast %93 : vector<2x128xf32> to vector<1x1x2x128xf32>
    tpu.vector_store %arg4[%c0_25, %c1_26, %c0_27, %c0_28], %96 {strides = array<i32>} : memref<1x2x2x128xf32, #tpu.memory_space<vmem>>, vector<1x1x2x128xf32>,
    return
  }
  func.func @transform_0(%arg0: i32, %arg1: i32) -> i32 {
    %c0_i32 = arith.constant 0 : i32
    %c0_i32_0 = arith.constant 0 : i32
    return %c0_i32 : i32
  }
  func.func @transform_1(%arg0: i32, %arg1: i32) -> (i32, i32, i32, i32) {
    %c0_i32 = arith.constant 0 : i32
    %c0_i32_0 = arith.constant 0 : i32
    %c0_i32_1 = arith.constant 0 : i32
    return %arg0, %c0_i32, %arg1, %c0_i32_0 : i32, i32, i32, i32
  }
  func.func @transform_2(%arg0: i32, %arg1: i32) -> (i32, i32, i32, i32) {
    %c0_i32 = arith.constant 0 : i32
    %c0_i32_0 = arith.constant 0 : i32
    %c0_i32_1 = arith.constant 0 : i32
    return %arg0, %c0_i32, %arg1, %c0_i32_0 : i32, i32, i32, i32
  }
}

</mosaic_0001>

<bundles_post_ra>
// kernel: tpu_custom_call.1
= control target key start
LH: loop header
LB: loop body
LE: loop exit
PB: predicated region body
PF: predicated region fallthrough
CT: control target
= control target key end

     0   :  { %7 = vsyncpa [#allocation5], 0  ;;  %s853_s0 = inlined_call_operand.hbm [shape: f32[24], index: 0, kind: input, shape index: {}]   ;;  %s854_s1 = inlined_call_operand.hbm [shape: f32[2,4,2,128], index: 1, kind: input, shape index: {}]   ;;  %s855_s2 = inlined_call_operand.hbm [shape: f32[2,2,2,128], index: 2, kind: output, shape index: {}]  }
   0x1   :  { %8 = vsyncpa [#allocation3], 0 }
   0x2   :  { %10 = vsyncpa [#allocation3 + $0x1], 0 }
   0x3   :  { %11 = vsyncpa [#allocation4], 0 }
   0x4   :  { %13 = vsyncpa [#allocation4 + $0x1], 0  ;;  %s636_s9 = smov 0   ;;  %s638_s10 = smov 0  }
   0x5   :  { %s640_s11 = smov 0   ;;  %s642_s12 = smov 0  }
   0x6   :  { %s644_s13 = smov 0   ;;  %s646_s14 = smov 0  }
   0x7 LB: > { %s379_s15 = sadd.s32 4294967295, %s612_s14   ;;  %s380_s16 = sadd.s32 4294967294, %s612_s14   ;;  %s612_s14 = sphi %s646_s14, %s19_s14   ;;  %s608_s13 = sphi %s644_s13, %s875_s13   ;;  %s604_s12 = sphi %s642_s12, %s874_s12   ;;  %s600_s11 = sphi %s640_s11, %s873_s11   ;;  %s596_s10 = sphi %s638_s10, %s872_s10   ;;  %s592_s9 = sphi %s636_s9, %s871_s9  }
   0x8   : > { %s61_s17 = sadd.s32 1, %s600_s11  ;;  %p68_p0 = scmp.ne.s32.totalorder %s600_s11, %s596_s10 }
   0x9   : > { %p69_p1 = scmp.eq.s32.totalorder %s612_s14, 0  ;;  %p74_p2 = scmp.ne.s32.totalorder %s596_s10, %s592_s9 }
   0xa   : > { %p674_p3 = scmp.eq.s32.totalorder %s379_s15, 0  ;;  %p100_p4 = scmp.eq.s32.totalorder %s379_s15, 1 }
   0xb   : > { %p70_p5 = por %p69_p1, %p68_p0  ;;  %p106_p6 = scmp.eq.s32.totalorder %s380_s16, 1 }
   0xc   : > { %s860_s18 = scalar_select %p674_p3, 1, 0 }
   0xd   : > { %p680_p7 = por %p674_p3, %p74_p2  ;;  %p684_p8 = por %p100_p4, %p68_p0 }
   0xe   : > { %p688_p9 = por %p106_p6, %p74_p2  ;;  %p381_p10 = scmp.ge.s32.totalorder %s612_s14, 1 }
   0xf   : > { %s861_s19 = scalar_select %p680_p7, 1, 0 }
  0x10   : > { %s862_s20 = scalar_select %p684_p8, 1, 0 }
  0x11   : > { %s863_s21 = scalar_select %p688_p9, 1, 0 }
  0x12   : > { %p113_p11 = scmp.lt.s32.totalorder %s612_s14, 3  ;;  %p425_p1 = scmp.lt.s32.totalorder %s612_s14, 2 }
  0x13   : > { %s135_s23 = sand.u32 1, %s600_s11   ;;  %s31_s25 = sadd.s32 1, %s608_s13 }
  0x14   : > { %p695_p13 = pnand %p381_p10, %p113_p11  ;;  %p703_p0 = pnand %p425_p1, %p70_p5 }
  0x15   : > { %s384_s26 = sshll.u32 %s135_s23, 3  ;;  %p33_p4 = scmp.ge.s32.totalorder %s31_s25, 2 }
  0x16   : > { %p412_p7 = pneg %p695_p13  ;;  %s483_s29 = scalar_lea.hbm %s853_s0, 16 }
  0x17   : > { %p484_p6 = scmp.ne.s32.totalorder %s853_s0, %s483_s29  ;;  %p490_p5 = scmp.lt.u32.totalorder %s483_s29, %s853_s0 }
  0x18   : > { %p413_p2 = pnand %p412_p7, %p674_p3 }
  0x1a   : > { %p485_p10 = pneg %p413_p2 }
  0x1c   : > { %p486_p11 = pnand %p485_p10, %p484_p6 }
  0x1e   : > { %p487_p12 = pneg %p486_p11 }
  0x20   : > { %p492_p1 = pnand %p490_p5, %p487_p12 }
  0x22   : > { %495 = shalt.err (!%p492_p1)
}
  0x23   : > { %s614_s6 = smov [#allocation2]   ;;  %s877_s25 = smov (%p33_p4, %s31_s25), 0 }
  0x24   : > { %415 = dma.hbm_to_smem (!%p413_p2), %s853_s0, 16, %s614_s6, [#allocation5]  }
  0x25   : > { %s402_s15 = sshll.u32 %s608_s13, 7  ;;  %s56_s16 = ssub.s32 %s608_s13, %s877_s25 }
  0x26   : > { %s730_s29 = scalar_lea.hbm %s854_s1, %s402_s15  ;;  %p59_p7 = scmp.eq.s32.totalorder %s56_s16, 0 }
  0x27   : > { %s139_s30 = scalar_lea.vmem [#allocation6], %s384_s26  ;;  %s739_s5 = scalar_lea.sflag [#allocation3], %s135_s23 }
  0x28   : > { %s147_s3 = sshll.u32 %s139_s30, 4  ;;  %s496_s6 = scalar_lea.hbm %s730_s29, 128  ;;  %s732_s3 = int_to_ptr.vmem [resolvable:$true] %s147_s3 }
  0x29   : > { %s737_s4 = scalar_select %p59_p7, %s600_s11, %s61_s17  }
  0x2a   : > { %p497_p12 = scmp.ne.s32.totalorder %s730_s29, %s496_s6  ;;  %p498_p2 = pneg %p703_p0 }
  0x2b   : > { %s501_s26 = scalar_lea.hbm %s854_s1, 256  ;;  %p502_p10 = scmp.lt.u32.totalorder %s730_s29, %s854_s1 }
  0x2c   : > { %p499_p4 = pnand %p498_p2, %p497_p12  ;;  %p503_p11 = scmp.lt.u32.totalorder %s501_s26, %s496_s6 }
  0x2d   : > { %p505_p1 = scmp.lt.u32.totalorder %s496_s6, %s730_s29 }
  0x2e   : > { %p500_p6 = pneg %p499_p4  ;;  %p504_p5 = por %p503_p11, %p502_p10 }
  0x30   : > { %p506_p7 = por %p505_p1, %p504_p5 }
  0x32   : > { %p507_p9 = pnand %p506_p7, %p500_p6 }
  0x34   : > { %510 = shalt.err (!%p507_p9)
}
  0x35   : > { %s511_s17 = scalar_lea.vmem %s732_s3, 128  ;;  %s615_s23 = smov [#allocation6]  }
  0x36   : > { %p512_p12 = scmp.ne.s32.totalorder %s732_s3, %s511_s17  ;;  %s516_s27 = sshll.u32 %s615_s23, 4  ;;  %s517_s27 = int_to_ptr.vmem [resolvable:$false] %s516_s27 }
  0x37   : > { %s518_s28 = scalar_lea.vmem %s517_s27, 256  ;;  %p519_p3 = scmp.lt.s32.totalorder %s732_s3, %s517_s27 }
  0x38   : > { %p514_p4 = pnand %p512_p12, %p498_p2  ;;  %p520_p10 = scmp.lt.s32.totalorder %s518_s28, %s511_s17 }
  0x3a   : > { %p515_p8 = pneg %p514_p4  ;;  %p521_p11 = por %p520_p10, %p519_p3 }
  0x3c   : > { %p522_p5 = pnand %p521_p11, %p515_p8 }
  0x3e   : > { %525 = shalt.err (!%p522_p5)
}
  0x3f   : > { %s616_s30 = smov 32   ;;  %s617_s6 = smov 2  }
  0x40   : > { %419 = dma.hbm_to_vmem [thread:$0]  (!%p703_p0), %s730_s29, 128, %s732_s3, %s739_s5, %s616_s30, %s616_s30, %s617_s6  }
  0x41   : > { %159 = sbr.rel (%p695_p13) target bundleno = 136 (0x88), region = 28  ;;  %p866_p9 = scmp.ne.s32.totalorder (!%p695_p13), %s860_s18, 0 }
  0x48   : > { %579 = dma.done.wait (%p866_p9), [#allocation5], 16  }
  0x49   : > { %581 = vsyncadd (%p866_p9), [#allocation5], 4294967280  ;;  %s774_s7 = sand.u32 1, %s596_s10   ;;  %p867_p3 = scmp.ne.s32.totalorder %s861_s19, 0 }
  0x4a   : > { %s389_s8 = sshll.u32 %s774_s7, 3  ;;  %s166_s26 = scalar_lea.sflag [#allocation3], %s774_s7 }
  0x4b   : > { %s169_s15 = scalar_lea.vmem [#allocation6], %s389_s8 }
  0x4c   : > { %583 = dma.done.wait (%p867_p3), %s166_s26, 128  }
  0x4d   : > { %585 = vsyncadd (%p867_p3), %s166_s26, 4294967168 }
  0x4e   : > { %174 = sfence }
  0x4f   : > { %s783_s22 = smul.u32 12, %s604_s12  ;;  %v192_v0 = vld [vmem:[%s169_s15] sm:$0x3]  ;;  %v391_v1 = vld [vmem:[%s169_s15 + $0x2] sm:$0x3]  ;;  %p868_p13 = scmp.ne.s32.totalorder %s862_s20, 0 }
  0x50   : > { %v392_v2 = vld [vmem:[%s169_s15 + $0x4] sm:$0x3]  ;;  %v393_v4 = vld [vmem:[%s169_s15 + $0x6] sm:$0x3] }
  0x51   : > { %s236_s18 = sadd.s32 8, %s783_s22  ;;  %s240_s29 = sadd.s32 9, %s783_s22 }
  0x52   : > { %s237_s24 = sld [smem:[#allocation2 + %s236_s18]]  ;;  %s245_s5 = sadd.s32 10, %s783_s22 }
  0x53   : > { %s241_s3 = sld [smem:[#allocation2 + %s240_s29]]  ;;  %s250_s19 = sadd.s32 11, %s783_s22 }
  0x54   : > { %s246_s16 = sld [smem:[#allocation2 + %s245_s5]]  ;;  %s202_s23 = sadd.s32 1, %s783_s22 }
  0x55   : > { %s251_s17 = sld [smem:[#allocation2 + %s250_s19]]  ;;  %s217_s27 = sadd.s32 4, %s783_s22 }
  0x56   : > { %s221_s28 = sadd.s32 5, %s783_s22  ;;  %s199_s30 = sld [smem:[#allocation2 + %s783_s22]] }
  0x57   : > { %s203_s6 = sld [smem:[#allocation2 + %s202_s23]]  ;;  %s207_s18 = sadd.s32 2, %s783_s22 }
  0x58   : > { %v238_v3 = vstv %s237_s24  ;;  %s218_s8 = sld [smem:[#allocation2 + %s217_s27]]  ;;  %s226_s29 = sadd.s32 6, %s783_s22 }
  0x59   : > { %v239_v5 = vmul.f32 %v238_v3, %v192_v0  ;;  %v242_v6 = vstv %s241_s3  ;;  %s222_s26 = sld [smem:[#allocation2 + %s221_s28]]  ;;  %s212_s15 = sadd.s32 3, %s783_s22 }
  0x5a   : > { %v243_v7 = vmul.f32 %v391_v1, %v242_v6  ;;  %v247_v8 = vstv %s246_s16  ;;  %s208_s5 = sld [smem:[#allocation2 + %s207_s18]]  ;;  %s231_s19 = sadd.s32 7, %s783_s22 }
  0x5b   : > { %v248_v9 = vmul.f32 %v392_v2, %v247_v8  ;;  %v252_v10 = vstv %s251_s17  ;;  %s227_s24 = sld [smem:[#allocation2 + %s226_s29]]  ;;  %s390_s22 = sshll.u32 %s774_s7, 2 }
  0x5c   : > { %v244_v11 = vadd.f32 %v243_v7, %v239_v5  ;;  %v253_v12 = vmul.f32 %v393_v4, %v252_v10  ;;  %v200_v15 = vstv %s199_s30  ;;  %s213_s23 = sld [smem:[#allocation2 + %s212_s15]]  ;;  %s190_s16 = scalar_lea.vmem [#allocation7], %s390_s22 }
  0x5d   : > { %v204_v16 = vstv %s203_s6  ;;  %s232_s3 = sld [smem:[#allocation2 + %s231_s19]]  ;;  %v201_v20 = vmul.f32 %v200_v15, %v192_v0  ;;  %s282_s17 = sshll.u32 %s190_s16, 4  ;;  %s799_s17 = int_to_ptr.vmem [resolvable:$true] %s282_s17 }
  0x5e   : > { %v249_v13 = vadd.f32 %v248_v9, %v244_v11  ;;  %v219_v18 = vstv %s218_s8  ;;  %v205_v21 = vmul.f32 %v391_v1, %v204_v16  ;;  %s403_s27 = sshll.u32 %s604_s12, 6  ;;  %s268_s8 = scalar_lea.sflag [#allocation4], %s774_s7 }
  0x5f   : > { %v223_v19 = vstv %s222_s26  ;;  %v220_v22 = vmul.f32 %v219_v18, %v192_v0  ;;  %s804_s6 = scalar_lea.hbm %s855_s2, %s403_s27  ;;  %s526_s26 = scalar_lea.vmem %s799_s17, 64 }
  0x60   : > { %v254_v14 = vadd.f32 %v253_v12, %v249_v13  ;;  %v224_v23 = vmul.f32 %v391_v1, %v223_v19  ;;  %v209_v24 = vstv %s208_s5  ;;  %v206_v26 = vadd.f32 %v205_v21, %v201_v20  ;;  %p527_p8 = scmp.ne.s32.totalorder %s799_s17, %s526_s26  ;;  %s618_s12 = smov [#allocation7]  }
  0x61   : > { %v228_v25 = vstv %s227_s24  ;;  %v210_v27 = vmul.f32 %v392_v2, %v209_v24  ;;  %s530_s18 = sshll.u32 %s618_s12, 4  ;;  %s531_s18 = int_to_ptr.vmem [resolvable:$false] %s530_s18 }
  0x62   : > { %v255_v17 = vadd.f32 1e-07, %v254_v14  ;;  %v225_v28 = vadd.f32 %v224_v23, %v220_v22  ;;  %v229_v29 = vmul.f32 %v392_v2, %v228_v25  ;;  %v214_v30 = vstv %s213_s23  ;;  %p528_p0 = pnand %p527_p8, %p868_p13  ;;  %s532_s29 = scalar_lea.vmem %s531_s18, 128 }
  0x63   : > { %v233_v31 = vstv %s232_s3  ;;  %v211_v32 = vadd.f32 %v210_v27, %v206_v26  ;;  %v215_v33 = vmul.f32 %v393_v4, %v214_v30  ;;  %p533_p6 = scmp.lt.s32.totalorder %s799_s17, %s531_s18  ;;  %p534_p1 = scmp.lt.s32.totalorder %s532_s29, %s526_s26 }
  0x64   : > { %481 = vrcp.f32 %v255_v17  ;;  %v230_v34 = vadd.f32 %v229_v29, %v225_v28  ;;  %v234_v35 = vmul.f32 %v393_v4, %v233_v31  ;;  %p529_p2 = pneg %p528_p0 }
  0x65   : > { %v216_v38 = vadd.f32 %v215_v33, %v211_v32  ;;  %p535_p7 = por %p534_p1, %p533_p6 }
  0x66   : > { %v235_v40 = vadd.f32 %v234_v35, %v230_v34 }
  0x67   : > { %p536_p12 = pnand %p535_p7, %p529_p2 }
  0x6e   : > { %v482_v36 = vpop.eup %481 }
  0x6f   : > { %v257_v37 = vmul.f32 %v482_v36, %v255_v17 }
  0x71   : > { %v258_v39 = vsub.f32 2.0, %v257_v37 }
  0x73   : > { %v259_v41 = vmul.f32 %v482_v36, %v258_v39 }
  0x75   : > { %v260_v42 = vmul.f32 %v259_v41, %v216_v38  ;;  %v263_v43 = vmul.f32 %v259_v41, %v235_v40 }
  0x77   : > { %v394_v44 = vadd.f32 -1.0, %v260_v42  ;;  %v395_v45 = vadd.f32 -1.0, %v263_v43 }
  0x79   : > { %262 = vst [vmem:[%s190_s16] sm:$0x3] %v394_v44  ;;  %396 = vst [vmem:[%s190_s16 + $0x2] sm:$0x3] %v395_v45 }
  0x7a   : > { %539 = shalt.err (!%p536_p12)
}
  0x7b   : > { %s540_s5 = scalar_lea.hbm %s804_s6, 64  ;;  %s544_s19 = scalar_lea.hbm %s855_s2, 128 }
  0x7c   : > { %p541_p4 = scmp.ne.s32.totalorder %s804_s6, %s540_s5  ;;  %p545_p5 = scmp.lt.u32.totalorder %s804_s6, %s855_s2 }
  0x7d   : > { %p546_p9 = scmp.lt.u32.totalorder %s544_s19, %s540_s5  ;;  %p548_p8 = scmp.lt.u32.totalorder %s540_s5, %s804_s6 }
  0x7e   : > { %p542_p10 = pnand %p541_p4, %p868_p13 }
  0x7f   : > { %p547_p3 = por %p546_p9, %p545_p5 }
  0x80   : > { %p543_p11 = pneg %p542_p10 }
  0x81   : > { %p549_p0 = por %p548_p8, %p547_p3 }
  0x83   : > { %p550_p2 = pnand %p549_p0, %p543_p11 }
  0x85   : > { %553 = shalt.err (!%p550_p2)
}
  0x86   : > { %s619_s22 = smov 32   ;;  %s620_s16 = smov 2  }
  0x87   : > { %410 = dma.vmem_to_hbm [thread:$0]  (%p868_p13), %s799_s17, 64, %s804_s6, %s268_s8, %s619_s22, %s619_s22, %s620_s16  }
  0x88 PF: > { %s297_s27 = sand.u32 1, %s592_s9   ;;  %p869_p6 = scmp.ne.s32.totalorder %s863_s21, 0 }
  0x89   : > { %p870_p1 = scmp.ge.s32.totalorder %s612_s14, 2  ;;  %s298_s28 = scalar_lea.sflag [#allocation4], %s297_s27 }
  0x8b   : > { %p421_p7 = pnand %p870_p1, %p869_p6 }
  0x8d   : > { %587 = dma.done.wait (!%p421_p7), %s298_s28, 64  }
  0x8e   : > { %589 = vsyncadd (!%p421_p7), %s298_s28, 4294967232  ;;  %s19_s14 = sadd.s32 1, %s612_s14   ;;  %s871_s9 = smov %s596_s10 }
  0x8f   : > { %p16_p12 = scmp.ge.s32.totalorder %s19_s14, 4   ;;  %s872_s10 = smov %s600_s11 }
  0x90   : > { %s873_s11 = smov %s737_s4  ;;  %s874_s12 = smov %s608_s13 }
  0x91   : > { %s875_s13 = smov %s877_s25  ;;  %18 = sbr.rel (!%p16_p12) target bundleno = 7 (0x7), region = 82 }
  0x98   :  { %303 = vsyncpa [#allocation3], 1 }
  0x99   :  { %305 = vsyncpa [#allocation3 + $0x1], 1 }
  0x9a   :  { %306 = vsyncpa [#allocation4], 1 }
  0x9b   :  { %308 = vsyncpa [#allocation4 + $0x1], 1 }
  0x9c   :  { %309 = vsyncpa [#allocation5], 1 }
  0x9d   :  { %311 = vsyncpa [#allocation5 + $0x1], 1 }

</bundles_post_ra>
